<compile_context>
chip_gen: v7x
topology: tpu7x:2x2x1
jax: 0.10.0
libtpu: 0.0.40
codegen_flags: <defaults>
</compile_context>

<pallas_src>
import functools

import numpy as np
import jax
import jax.numpy as jnp
from jax import lax
from jax.experimental import pallas as pl
from jax.experimental.pallas import tpu as pltpu


_KRON_MAX_HW = 2048  # flattened single-matmul path when H*W <= this


# ----------------------------------------------------------------------------
# Parameter construction (matches GaussianBlur.__init__ / create_gaussian_kernel)
# ----------------------------------------------------------------------------
@functools.lru_cache(maxsize=None)
def _gaussian_taps(sigma: float) -> np.ndarray:
    """1D taps such that outer(k1d, k1d) == the module's normalized 2D kernel."""
    ksize = int(2 * 4 * sigma + 1)
    if ksize % 2 == 0:
        ksize = int(2 * 4 * sigma + 2)
    mean = ksize // 2
    t = np.arange(ksize, dtype=np.float64)
    k = np.exp(-((t - mean) ** 2) / (2.0 * sigma ** 2))
    return k / k.sum()


def make_gaussian_kernel_2d(sigma: float) -> np.ndarray:
    k1 = _gaussian_taps(float(sigma))
    return np.outer(k1, k1).astype(np.float32)


@functools.lru_cache(maxsize=None)
def _band_reflect_matrix(n: int, sigma: float) -> np.ndarray:
    """(n, n) matrix B so that B @ x == 1D 'valid' correlation of the Gaussian
    taps with the reflect-padded signal x (PyTorch F.pad(mode='reflect'))."""
    k1d = _gaussian_taps(sigma)
    ksize = k1d.shape[0]
    pad = ksize // 2
    if pad >= n:
        raise ValueError(
            f"reflect padding requires ksize//2 ({pad}) < spatial dim ({n}); "
            f"sigma={sigma} is too large for this image size")
    o = np.arange(n)[:, None]                       # (n, 1) output rows
    i = o + np.arange(ksize)[None, :] - pad         # (n, ksize) input indices
    i = np.where(i < 0, -i, i)                      # reflect left edge
    i = np.where(i >= n, 2 * (n - 1) - i, i)        # reflect right edge
    a = np.zeros((n, n), dtype=np.float64)
    np.add.at(a, (np.broadcast_to(o, i.shape), i),
              np.broadcast_to(k1d[None, :], i.shape))
    return a.astype(np.float32)


@functools.lru_cache(maxsize=None)
def _kron_operator(h: int, w: int, sigma: float) -> np.ndarray:
    """(H*W, H*W) operator M with  blur(X).reshape(-1) == X.reshape(-1) @ M
    for a row-major flattened plane X."""
    av = _band_reflect_matrix(h, sigma)
    ah = _band_reflect_matrix(w, sigma)
    return np.ascontiguousarray(np.kron(av, ah).T.astype(np.float32))


def _vmem_limit_bytes() -> int:
    """Generation-aware VMEM limit (~75% of physical, capped at 96 MiB)."""
    try:
        cap = int(pltpu.get_tpu_info().vmem_capacity_bytes)
    except Exception:
        cap = 64 << 20          # conservative fallback (v7x-sized)
    return int(min(0.75 * cap, 96 << 20))


# ----------------------------------------------------------------------------
# Small-plane path: one lane-dense matmul  X(NC, HW) @ kron(A_v, A_h)^T
# ----------------------------------------------------------------------------
def _kron_blur_kernel(x_ref, m_ref, o_ref):
    # x_ref: (bm, HW) flattened planes; m_ref: (HW, bn) operator columns.
    o_ref[...] = jnp.dot(
        x_ref[...], m_ref[...], preferred_element_type=jnp.float32
    ).astype(o_ref.dtype)


def _blur_kron(x2d: jax.Array, m: jax.Array, vmem_limit: int) -> jax.Array:
    nc, hw = x2d.shape
    # Plane-batch (sublane) block: multiple of 8, or the full dim.
    bm = nc if nc <= 8 else min((nc // 8) * 8, 512)
    grid_i = pl.cdiv(nc, bm)
    # Operator-column (lane) block: keep >= 2 total grid steps when possible
    # so both v7x TensorCores get work and prologue/epilogue DMAs overlap.
    if grid_i >= 2 or hw % 256 != 0:
        bn = hw
    else:
        bn = hw // 2
    grid_j = pl.cdiv(hw, bn)

    return pl.pallas_call(
        _kron_blur_kernel,
        out_shape=jax.ShapeDtypeStruct((nc, hw), x2d.dtype),
        grid=(grid_i, grid_j),
        in_specs=[
            pl.BlockSpec((bm, hw), lambda i, j: (i, 0)),   # plane rows
            pl.BlockSpec((hw, bn), lambda i, j: (0, j)),   # operator columns
        ],
        out_specs=pl.BlockSpec((bm, bn), lambda i, j: (i, j)),
        compiler_params=pltpu.CompilerParams(
            dimension_semantics=("parallel", "parallel"),
            vmem_limit_bytes=vmem_limit,
        ),
    )(x2d, m)


# ----------------------------------------------------------------------------
# Large-plane path: separable two-pass banded matmul (shared-RHS, no broadcast)
# ----------------------------------------------------------------------------
def _sep_blur_kernel(aht_ref, avt_ref, x_ref, o_ref):
    # aht_ref : (W, W) = A_h^T  horizontal band matrix (reflect folded in)
    # avt_ref : (H, H) = A_v^T  vertical band matrix
    # x_ref / o_ref : (B, H, W) batch of image planes
    x = x_ref[...]
    b, h, w = x.shape
    # Horizontal pass: one shared-RHS matmul with M = B*H rows on the MXU.
    y = jnp.dot(x.reshape(b * h, w), aht_ref[...],
                preferred_element_type=jnp.float32).reshape(b, h, w)
    # Vertical pass: XLU transpose (otherwise-idle slot), shared-RHS matmul
    # with M = B*W rows, transpose back.  No per-plane broadcast of A_v.
    yt = jnp.swapaxes(y, 1, 2)                                    # (B, W, H)
    zt = jnp.dot(yt.reshape(b * w, h), avt_ref[...],
                 preferred_element_type=jnp.float32).reshape(b, w, h)
    o_ref[...] = jnp.swapaxes(zt, 1, 2).astype(o_ref.dtype)


def _pick_plane_batch(nc: int, h: int, w: int, vmem_limit: int) -> int:
    """Plane batch B: VMEM-bounded (double-buffered blocks + f32 temporaries),
    capped so the grid keeps >= 2 steps, preferring a divisor of nc."""
    resident = 4 * (h * h + w * w)            # band matrices (held once)
    per_plane = 4 * h * w * (2 + 2 + 3)       # in dbuf + out dbuf + y/yt/zt temps
    budget = max(int(0.5 * vmem_limit) - resident, per_plane)
    cap = max(1, min(budget // per_plane, nc))
    if nc >= 2:
        cap = min(cap, max(1, nc // 2))       # >= 2 grid steps (pipeline/megacore)
    for b in range(cap, 0, -1):               # prefer no ragged tail, but never
        if nc % b == 0:                       # pay more than 2x for it
            if 2 * b >= cap:
                return b
            break
    return cap


def _blur_separable(x3d, avt, aht, vmem_limit):
    nc, h, w = x3d.shape
    bp = _pick_plane_batch(nc, h, w, vmem_limit)
    return pl.pallas_call(
        _sep_blur_kernel,
        out_shape=jax.ShapeDtypeStruct((nc, h, w), x3d.dtype),
        grid=(pl.cdiv(nc, bp),),
        in_specs=[
            pl.BlockSpec((w, w), lambda i: (0, 0)),        # A_h^T (fetched once)
            pl.BlockSpec((h, h), lambda i: (0, 0)),        # A_v^T (fetched once)
            pl.BlockSpec((bp, h, w), lambda i: (i, 0, 0)),
        ],
        out_specs=pl.BlockSpec((bp, h, w), lambda i: (i, 0, 0)),
        compiler_params=pltpu.CompilerParams(
            dimension_semantics=("parallel",),
            vmem_limit_bytes=vmem_limit,
        ),
    )(aht, avt, x3d)


# ----------------------------------------------------------------------------
# Public entry point
# ----------------------------------------------------------------------------
def gaussian_blur(x: jax.Array, sigma: float) -> jax.Array:
    """x: (N, C, H, W) float32 -> (N, C, H, W) float32 (reflect-padded blur)."""
    n, c, h, w = x.shape
    nc = n * c
    hw = h * w
    sigma = float(sigma)
    vmem_limit = _vmem_limit_bytes()

    if hw <= _KRON_MAX_HW:
        # Lane-dense single-matmul path (small planes).
        m = jnp.asarray(_kron_operator(h, w, sigma))            # (HW, HW)
        out = _blur_kron(x.reshape(nc, hw), m, vmem_limit)
        return out.reshape(n, c, h, w)

    # Separable two-pass path (larger planes).
    # Default matmul precision kept (f32 path verified against the conv ref);
    # casting to bf16 would ~2-4x MXU throughput but breaks the 1e-5 tolerance.
    avt = jnp.asarray(_band_reflect_matrix(h, sigma).T)         # (H, H) = A_v^T
    aht = jnp.asarray(_band_reflect_matrix(w, sigma).T)         # (W, W) = A_h^T
    out = _blur_separable(x.reshape(nc, h, w), avt, aht, vmem_limit)
    return out.reshape(n, c, h, w)


# ----------------------------------------------------------------------------
# Pure-JAX reference (depthwise conv, valid, on reflect-padded input).
# ----------------------------------------------------------------------------
def gaussian_blur_ref(x: jax.Array, sigma: float) -> jax.Array:
    N, C, H, W = x.shape
    kern2d = make_gaussian_kernel_2d(sigma)
    ksize = kern2d.shape[0]
    pad = ksize // 2
    x_pad = jnp.pad(x, ((0, 0), (0, 0), (pad, pad), (pad, pad)), mode="reflect")
    w = jnp.asarray(kern2d)[None, None]          # (1,1,k,k) OIHW
    w = jnp.tile(w, (C, 1, 1, 1))                # depthwise: (C,1,k,k)
    return lax.conv_general_dilated(
        x_pad, w,
        window_strides=(1, 1), padding="VALID",
        dimension_numbers=("NCHW", "OIHW", "NCHW"),
        feature_group_count=C,
    )


if __name__ == "__main__":
    sigma = 1.0  # -> ksize = 9, pad = 4

    key = jax.random.PRNGKey(0)

    # Small planes -> flattened kron/matmul path (lane-dense, MXU-filling).
    x_small = jax.random.normal(key, (2, 4, 16, 16), dtype=jnp.float32)
    out_small = jax.block_until_ready(gaussian_blur(x_small, sigma))
    ref_small = jax.block_until_ready(gaussian_blur_ref(x_small, sigma))
    np.testing.assert_allclose(np.asarray(out_small), np.asarray(ref_small),
                               rtol=1e-5, atol=1e-5)

    # Larger planes -> separable two-pass (shared-RHS banded matmul) path.
    x_large = jax.random.normal(jax.random.fold_in(key, 1), (1, 2, 64, 64),
                                dtype=jnp.float32)
    out_large = jax.block_until_ready(gaussian_blur(x_large, sigma))
    ref_large = jax.block_until_ready(gaussian_blur_ref(x_large, sigma))
    np.testing.assert_allclose(np.asarray(out_large), np.asarray(ref_large),
                               rtol=1e-5, atol=1e-5)

    print("KERNEL_OK")
</pallas_src>

<mosaic_0001>
module attributes {stable_mosaic.version = 11 : i64} {
  func.func @_kron_blur_kernel(%arg0: i32, %arg1: i32, %arg2: memref<8x256xf32, #tpu.memory_space<vmem>>, %arg3: memref<256x128xf32, #tpu.memory_space<vmem>>, %arg4: memref<8x128xf32, #tpu.memory_space<vmem>>) attributes {dimension_semantics = [#tpu.dimension_semantics<parallel>, #tpu.dimension_semantics<parallel>], iteration_bounds = array<i64: 1, 2>, scalar_prefetch = 0 : i64, scratch_operands = 0 : i64, tpu.core_type = #tpu.core_type<tc>, window_params = [{transform_indices = @transform_0, window_bounds = array<i64: 8, 256>}, {transform_indices = @transform_1, window_bounds = array<i64: 256, 128>}, {transform_indices = @transform_2, window_bounds = array<i64: 8, 128>}]} {
    %c0 = arith.constant 0 : index
    %c0_0 = arith.constant 0 : index
    %0 = vector.load %arg2[%c0, %c0_0] : memref<8x256xf32, #tpu.memory_space<vmem>>, vector<8x256xf32>
    %c0_1 = arith.constant 0 : index
    %c0_2 = arith.constant 0 : index
    %1 = vector.load %arg3[%c0_1, %c0_2] : memref<256x128xf32, #tpu.memory_space<vmem>>, vector<256x128xf32>
    %cst = arith.constant dense<0.000000e+00> : vector<8x128xf32>
    %2 = tpu.matmul %0, %1, %cst {dimension_numbers = #tpu.dot_dimension_numbers<[1], [0], [0], [1], [0, 0, 1, 1], [], []>} : vector<8x256xf32>, vector<256x128xf32>, vector<8x128xf32> -> vector<8x128xf32>
    %c0_3 = arith.constant 0 : index
    %c0_4 = arith.constant 0 : index
    %3 = vector.load %arg4[%c0_3, %c0_4] : memref<8x128xf32, #tpu.memory_space<vmem>>, vector<8x128xf32>
    tpu.vector_store %arg4[%c0_3, %c0_4], %2 {strides = array<i32>} : memref<8x128xf32, #tpu.memory_space<vmem>>, vector<8x128xf32>,
    return
  }
  func.func @transform_0(%arg0: i32, %arg1: i32) -> (i32, i32) {
    %c0_i32 = arith.constant 0 : i32
    %c0_i32_0 = arith.constant 0 : i32
    return %arg0, %c0_i32 : i32, i32
  }
  func.func @transform_1(%arg0: i32, %arg1: i32) -> (i32, i32) {
    %c0_i32 = arith.constant 0 : i32
    %c0_i32_0 = arith.constant 0 : i32
    return %c0_i32, %arg1 : i32, i32
  }
  func.func @transform_2(%arg0: i32, %arg1: i32) -> (i32, i32) {
    %c0_i32 = arith.constant 0 : i32
    return %arg0, %arg1 : i32, i32
  }
}

</mosaic_0001>

<bundles_post_ra>
// kernel: tpu_custom_call.1
= control target key start
LH: loop header
LB: loop body
LE: loop exit
PB: predicated region body
PF: predicated region fallthrough
CT: control target
= control target key end

     0   :  { %7 = vsyncpa [#allocation3], 0  ;;  %s990_s0 = inlined_call_operand.hbm [shape: f32[8,256], index: 0, kind: input, shape index: {}]   ;;  %s991_s1 = inlined_call_operand.hbm [shape: f32[256,256], index: 1, kind: input, shape index: {}]   ;;  %s992_s2 = inlined_call_operand.hbm [shape: f32[8,256], index: 2, kind: output, shape index: {}]  }
   0x1   :  { %8 = vsyncpa [#allocation6], 0 }
   0x2   :  { %10 = vsyncpa [#allocation6 + $0x1], 0 }
   0x3   :  { %11 = vsyncpa [#allocation4], 0 }
   0x4   :  { %13 = vsyncpa [#allocation4 + $0x1], 0  ;;  %s736_s9 = smov 0   ;;  %s738_s10 = smov 0  }
   0x5   :  { %s740_s11 = smov 0   ;;  %s742_s12 = smov 0  }
   0x6   :  { %s744_s13 = smov 0   ;;  %s746_s14 = smov 0  }
   0x7 LB: > { %s411_s15 = sadd.s32 4294967295, %s713_s14   ;;  %s412_s16 = sadd.s32 4294967294, %s713_s14   ;;  %s713_s14 = sphi %s746_s14, %s19_s14   ;;  %s709_s13 = sphi %s744_s13, %s1020_s13   ;;  %s705_s12 = sphi %s742_s12, %s1019_s12   ;;  %s701_s11 = sphi %s740_s11, %s1018_s11   ;;  %s697_s10 = sphi %s738_s10, %s1017_s10   ;;  %s693_s9 = sphi %s736_s9, %s1016_s9  }
   0x8   : > { %s64_s17 = sadd.s32 1, %s701_s11  ;;  %p71_p0 = scmp.ne.s32.totalorder %s701_s11, %s697_s10 }
   0x9   : > { %p72_p1 = scmp.eq.s32.totalorder %s713_s14, 0  ;;  %p77_p2 = scmp.ne.s32.totalorder %s697_s10, %s693_s9 }
   0xa   : > { %p774_p3 = scmp.eq.s32.totalorder %s411_s15, 0  ;;  %p103_p4 = scmp.eq.s32.totalorder %s411_s15, 1 }
   0xb   : > { %p778_p5 = por %p72_p1, %p71_p0  ;;  %p109_p6 = scmp.eq.s32.totalorder %s412_s16, 1 }
   0xc   : > { %s999_s18 = scalar_select %p774_p3, 1, 0 }
   0xd   : > { %p784_p7 = por %p774_p3, %p77_p2  ;;  %p788_p8 = por %p103_p4, %p71_p0 }
   0xe   : > { %p792_p9 = por %p109_p6, %p77_p2  ;;  %p413_p10 = scmp.ge.s32.totalorder %s713_s14, 1 }
   0xf   : > { %s1001_s20 = scalar_select %p784_p7, 1, 0 }
  0x10   : > { %s1002_s21 = scalar_select %p788_p8, 1, 0 }
  0x11   : > { %s1003_s22 = scalar_select %p792_p9, 1, 0 }
  0x12   : > { %p116_p11 = scmp.lt.s32.totalorder %s713_s14, 3  ;;  %s715_s24 = smov [#allocation2]  }
  0x13   : > { %s132_s25 = sshll.u32 %s715_s24, 4  ;;  %p514_p1 = scmp.lt.s32.totalorder %s713_s14, 2  ;;  %s133_s25 = int_to_ptr.vmem [resolvable:$true] %s132_s25 }
  0x14   : > { %p799_p13 = pnand %p413_p10, %p116_p11  ;;  %s28_s28 = sadd.s32 1, %s709_s13 }
  0x15   : > { %p808_p4 = pnand %p514_p1, %p778_p5  ;;  %p819_p6 = scmp.ge.s32.totalorder %s28_s28, 2 }
  0x16   : > { %s1004_s23 = scalar_select %p799_p13, 1, 0 }
  0x17   : > { %p501_p0 = pneg %p799_p13  ;;  %s143_s30 = sand.u32 1, %s701_s11  }
  0x18   : > { %s1005_s26 = scalar_select %p808_p4, 1, 0 }
  0x19   : > { %p814_p2 = pnand %p501_p0, %p774_p3  ;;  %s569_s5 = scalar_lea.hbm %s990_s0, 256 }
  0x1a   : > { %s1007_s29 = scalar_select %p819_p6, 1, 0 }
  0x1b   : > { %p570_p5 = scmp.ne.s32.totalorder %s990_s0, %s569_s5  ;;  %p571_p10 = pneg %p814_p2 }
  0x1c   : > { %p576_p0 = scmp.lt.u32.totalorder %s569_s5, %s990_s0 }
  0x1d   : > { %p572_p11 = pnand %p571_p10, %p570_p5 }
  0x1f   : > { %p573_p1 = pneg %p572_p11 }
  0x21   : > { %p578_p12 = pnand %p576_p0, %p573_p1 }
  0x23   : > { %581 = shalt.err (!%p578_p12)
}
  0x24   : > { %s582_s16 = scalar_lea.vmem %s133_s25, 256  ;;  %p590_p3 = scmp.lt.s32.totalorder %s133_s25, %s133_s25 }
  0x25   : > { %p583_p9 = scmp.ne.s32.totalorder %s133_s25, %s582_s16  ;;  %p591_p13 = scmp.lt.s32.totalorder %s582_s16, %s582_s16 }
  0x27   : > { %p585_p8 = pnand %p583_p9, %p571_p10  ;;  %p592_p4 = por %p591_p13, %p590_p3 }
  0x29   : > { %p586_p7 = pneg %p585_p8 }
  0x2b   : > { %p593_p6 = pnand %p592_p4, %p586_p7 }
  0x2d   : > { %596 = shalt.err (!%p593_p6)
}
  0x2e   : > { %504 = dma.hbm_to_vmem [thread:$0]  (!%p814_p2), %s990_s0, 256, %s133_s25, [#allocation3]  }
  0x2f   : > { %p1008_p9 = scmp.ne.s32.totalorder %s1007_s29, 0  ;;  %s416_s3 = sshll.u32 %s143_s30, 8 }
  0x30   : > { %s417_s5 = sshll.u32 %s709_s13, 7  ;;  %s147_s8 = scalar_lea.vmem [#allocation5], %s416_s3 }
  0x31   : > { %s1022_s28 = smov (%p1008_p9, %s28_s28), 0  ;;  %s850_s7 = scalar_lea.hbm %s991_s1, %s417_s5 }
  0x32   : > { %s61_s4 = ssub.s32 %s709_s13, %s1022_s28  ;;  %s153_s15 = sshll.u32 %s147_s8, 4  ;;  %s857_s15 = int_to_ptr.vmem [resolvable:$true] %s153_s15 }
  0x33   : > { %p62_p3 = scmp.eq.s32.totalorder %s61_s4, 0  ;;  %s859_s29 = scalar_lea.sflag [#allocation6], %s143_s30 }
  0x34   : > { %s597_s16 = scalar_lea.hbm %s850_s7, 4096  ;;  %p1009_p8 = scmp.ne.s32.totalorder %s1005_s26, 0 }
  0x35   : > { %s855_s25 = scalar_select %p62_p3, %s701_s11, %s64_s17  }
  0x36   : > { %p598_p7 = scmp.ne.s32.totalorder %s850_s7, %s597_s16  ;;  %p599_p12 = pneg %p1009_p8 }
  0x37   : > { %s602_s3 = scalar_lea.hbm %s991_s1, 8192  ;;  %p603_p2 = scmp.lt.u32.totalorder %s850_s7, %s991_s1 }
  0x38   : > { %p600_p13 = pnand %p599_p12, %p598_p7  ;;  %p604_p6 = scmp.lt.u32.totalorder %s602_s3, %s597_s16 }
  0x39   : > { %p606_p10 = scmp.lt.u32.totalorder %s597_s16, %s850_s7 }
  0x3a   : > { %p601_p4 = pneg %p600_p13  ;;  %p605_p5 = por %p604_p6, %p603_p2 }
  0x3c   : > { %p607_p11 = por %p606_p10, %p605_p5 }
  0x3e   : > { %p608_p1 = pnand %p607_p11, %p601_p4 }
  0x40   : > { %611 = shalt.err (!%p608_p1)
}
  0x41   : > { %s612_s17 = scalar_lea.vmem %s857_s15, 4096  ;;  %s716_s30 = smov [#allocation5]  }
  0x42   : > { %p613_p0 = scmp.ne.s32.totalorder %s857_s15, %s612_s17  ;;  %s617_s27 = sshll.u32 %s716_s30, 4  ;;  %s618_s27 = int_to_ptr.vmem [resolvable:$false] %s617_s27 }
  0x43   : > { %s619_s6 = scalar_lea.vmem %s618_s27, 8192  ;;  %p620_p7 = scmp.lt.s32.totalorder %s857_s15, %s618_s27 }
  0x44   : > { %p615_p9 = pnand %p613_p0, %p599_p12  ;;  %p621_p13 = scmp.lt.s32.totalorder %s619_s6, %s612_s17 }
  0x46   : > { %p616_p3 = pneg %p615_p9  ;;  %p622_p2 = por %p621_p13, %p620_p7 }
  0x48   : > { %p623_p6 = pnand %p622_p2, %p616_p3 }
  0x4a   : > { %626 = shalt.err (!%p623_p6)
}
  0x4b   : > { %s717_s8 = smov 256   ;;  %s718_s16 = smov 128  }
  0x4c   : > { %s719_s19 = smov 8   ;;  %p1010_p12 = scmp.ne.s32.totalorder %s1004_s23, 0 }
  0x4d   : > { %508 = dma.hbm_to_vmem [thread:$0]  (!%p1009_p8), %s850_s7, 4096, %s857_s15, %s859_s29, %s717_s8, %s718_s16, %s719_s19  }
  0x4e   : > { %165 = sbr.rel (%p1010_p12) target bundleno = 354 (0x162), region = 28  ;;  %p1011_p4 = scmp.ne.s32.totalorder (!%p1010_p12), %s999_s18, 0 }
  0x55   : > { %680 = dma.done.wait (%p1011_p4), [#allocation3], 256  }
  0x56   : > { %682 = vsyncadd (%p1011_p4), [#allocation3], 4294967040  ;;  %s894_s24 = sand.u32 1, %s697_s10   ;;  %p1012_p8 = scmp.ne.s32.totalorder %s1001_s20, 0 }
  0x57   : > { %s420_s3 = sshll.u32 %s894_s24, 8  ;;  %s172_s4 = scalar_lea.sflag [#allocation6], %s894_s24 }
  0x58   : > { %s898_s5 = scalar_lea.vmem [#allocation5], %s420_s3 }
  0x59   : > { %684 = dma.done.wait (%p1012_p8), %s172_s4, 4096  }
  0x5a   : > { %686 = vsyncadd (%p1012_p8), %s172_s4, 4294963200  ;;  %v214_v0 = vld [vmem:[%s898_s5 + $0x80] sm:$0xff]  ;;  %v215_v1 = vld [vmem:[%s898_s5 + $0x88] sm:$0xff]  ;;  %s421_s18 = sshll.u32 %s894_s24, 3  ;;  %s423_s20 = sshll.u32 %s705_s12, 7 }
  0x5b   : > { %v198_v2 = vld [vmem:[%s898_s5] sm:$0xff]  ;;  %v461_v3 = vpack.c.bf16 %v215_v1, %v214_v0  ;;  %v199_v4 = vld [vmem:[%s898_s5 + $0x8] sm:$0xff]  ;;  %v216_v5 = vld [vmem:[%s898_s5 + $0x90] sm:$0xff]  ;;  %s195_s23 = scalar_lea.vmem [#allocation7], %s421_s18  ;;  %s941_s29 = scalar_lea.hbm %s992_s2, %s423_s20 }
  0x5c   : > { %v217_v6 = vld [vmem:[%s898_s5 + $0x98] sm:$0xff]  ;;  %v463_v7 = vpack.c.bf16 %v199_v4, %v198_v2  ;;  %v200_v9 = vld [vmem:[%s898_s5 + $0x10] sm:$0xff]  ;;  %v218_v11 = vld [vmem:[%s898_s5 + $0xa0] sm:$0xff]  ;;  %s317_s26 = sshll.u32 %s195_s23, 4  ;;  %s302_s17 = scalar_lea.sflag [#allocation4], %s894_s24  ;;  %s943_s26 = int_to_ptr.vmem [resolvable:$true] %s317_s26 }
  0x5d   : > { %v465_v8 = vpack.c.bf16 %v217_v6, %v216_v5  ;;  %v201_v10 = vld [vmem:[%s898_s5 + $0x18] sm:$0xff]  ;;  %462 = vmatprep.subr.bf16.mxu0 %v461_v3  ;;  %v219_v12 = vld [vmem:[%s898_s5 + $0xa8] sm:$0xff]  ;;  %v202_v15 = vld [vmem:[%s898_s5 + $0x20] sm:$0xff]  ;;  %s627_s30 = scalar_lea.vmem %s943_s26, 128  ;;  %p1013_p10 = scmp.ne.s32.totalorder %s1002_s21, 0 }
  0x5e   : > { %464 = vmatpush3.bf16.msra.mxu0 %v463_v7  ;;  %v467_v13 = vpack.c.bf16 %v201_v10, %v200_v9  ;;  %v469_v14 = vpack.c.bf16 %v219_v12, %v218_v11  ;;  %v203_v16 = vld [vmem:[%s898_s5 + $0x28] sm:$0xff]  ;;  %v220_v17 = vld [vmem:[%s898_s5 + $0xb0] sm:$0xff]  ;;  %v221_v18 = vld [vmem:[%s898_s5 + $0xb8] sm:$0xff]  ;;  %p628_p5 = scmp.ne.s32.totalorder %s943_s26, %s627_s30  ;;  %s720_s12 = smov [#allocation7]  }
  0x5f   : > { %466 = vmatprep.subr.bf16.mxu0 %v465_v8  ;;  %v471_v19 = vpack.c.bf16 %v203_v16, %v202_v15  ;;  %v473_v20 = vpack.c.bf16 %v221_v18, %v220_v17  ;;  %v204_v21 = vld [vmem:[%s898_s5 + $0x30] sm:$0xff]  ;;  %v205_v22 = vld [vmem:[%s898_s5 + $0x38] sm:$0xff]  ;;  %v222_v23 = vld [vmem:[%s898_s5 + $0xc0] sm:$0xff]  ;;  %s631_s27 = sshll.u32 %s720_s12, 4  ;;  %s632_s27 = int_to_ptr.vmem [resolvable:$false] %s631_s27 }
  0x60   : > { %v223_v24 = vld [vmem:[%s898_s5 + $0xc8] sm:$0xff]  ;;  %v197_v25 = vld [vmem:[#allocation2 + $0x8] sm:$0xff]  ;;  %v475_v26 = vpack.c.bf16 %v205_v22, %v204_v21  ;;  %v206_v28 = vld [vmem:[%s898_s5 + $0x40] sm:$0xff]  ;;  %p629_p11 = pnand %p628_p5, %p1013_p10  ;;  %s633_s6 = scalar_lea.vmem %s632_s27, 256 }
  0x61   : > { %294 = vmatprep.mubr.f32.mxu0 %v197_v25  ;;  %v477_v27 = vpack.c.bf16 %v223_v24, %v222_v23  ;;  %v207_v29 = vld [vmem:[%s898_s5 + $0x48] sm:$0xff]  ;;  %v224_v30 = vld [vmem:[%s898_s5 + $0xd0] sm:$0xff]  ;;  %v225_v31 = vld [vmem:[%s898_s5 + $0xd8] sm:$0xff]  ;;  %p634_p0 = scmp.lt.s32.totalorder %s943_s26, %s632_s27  ;;  %p635_p9 = scmp.lt.s32.totalorder %s633_s6, %s627_s30 }
  0x62   : > { %468 = vmatpush3.bf16.msra.mxu0 %v467_v13  ;;  %v479_v32 = vpack.c.bf16 %v207_v29, %v206_v28  ;;  %v481_v33 = vpack.c.bf16 %v225_v31, %v224_v30  ;;  %v208_v34 = vld [vmem:[%s898_s5 + $0x50] sm:$0xff]  ;;  %v209_v35 = vld [vmem:[%s898_s5 + $0x58] sm:$0xff]  ;;  %v226_v36 = vld [vmem:[%s898_s5 + $0xe0] sm:$0xff]  ;;  %p630_p1 = pneg %p629_p11 }
  0x63   : > { %470 = vmatprep.subr.bf16.mxu0 %v469_v14  ;;  %v227_v37 = vld [vmem:[%s898_s5 + $0xe8] sm:$0xff]  ;;  %v483_v38 = vpack.c.bf16 %v209_v35, %v208_v34  ;;  %v210_v40 = vld [vmem:[%s898_s5 + $0x60] sm:$0xff]  ;;  %v228_v42 = vld [vmem:[%s898_s5 + $0xf0] sm:$0xff]  ;;  %p636_p3 = por %p635_p9, %p634_p0 }
  0x64   : > { %v485_v39 = vpack.c.bf16 %v227_v37, %v226_v36  ;;  %v211_v41 = vld [vmem:[%s898_s5 + $0x68] sm:$0xff]  ;;  %v229_v43 = vld [vmem:[%s898_s5 + $0xf8] sm:$0xff]  ;;  %v212_v46 = vld [vmem:[%s898_s5 + $0x70] sm:$0xff] }
  0x65   : > { %v487_v44 = vpack.c.bf16 %v211_v41, %v210_v40  ;;  %v489_v45 = vpack.c.bf16 %v229_v43, %v228_v42  ;;  %v213_v47 = vld [vmem:[%s898_s5 + $0x78] sm:$0xff]  ;;  %v196_v49 = vld [vmem:[#allocation2] sm:$0xff]  ;;  %p637_p7 = pnand %p636_p3, %p630_p1 }
  0x66   : > { %472 = vmatpush3.bf16.msra.mxu0 %v471_v19  ;;  %v491_v48 = vpack.c.bf16 %v213_v47, %v212_v46 }
  0x67   : > { %474 = vmatprep.subr.bf16.mxu0 %v473_v20 }
  0x6a   : > { %476 = vmatpush3.bf16.msra.mxu0 %v475_v26 }
  0x6b   : > { %478 = vmatprep.subr.bf16.mxu0 %v477_v27 }
  0x6e   : > { %480 = vmatpush3.bf16.msra.mxu0 %v479_v32 }
  0x6f   : > { %482 = vmatprep.subr.bf16.mxu0 %v481_v33 }
  0x72   : > { %484 = vmatpush3.bf16.msra.mxu0 %v483_v38 }
  0x73   : > { %486 = vmatprep.subr.bf16.mxu0 %v485_v39 }
  0x76   : > { %488 = vmatpush3.bf16.msra.mxu0 %v487_v44 }
  0x77   : > { %490 = vmatprep.subr.bf16.mxu0 %v489_v45 }
  0x7a   : > { %492 = vmatpush3.bf16.msra.mxu0 %v491_v48 }
  0x7d   : > { %295 = vmatmul.mubr.f32.vlgmr.msra.gmra.mrb[0].mxu0 %v196_v49 }
 0x150   : > { %v458_v50 = vpop.f32.mrb[0].mxu0 }
 0x151   : > { %v459_v51 = vpop.f32.mrb[1].mxu0 }
 0x152   : > { %v460_v52 = vadd.f32 %v459_v51, %v458_v50 }
 0x154   : > { %300 = vst [vmem:[%s195_s23] sm:$0xff] %v460_v52 }
 0x155   : > { %640 = shalt.err (!%p637_p7)
}
 0x156   : > { %s641_s8 = scalar_lea.hbm %s941_s29, 128  ;;  %s645_s24 = scalar_lea.hbm %s992_s2, 256 }
 0x157   : > { %p642_p13 = scmp.ne.s32.totalorder %s941_s29, %s641_s8  ;;  %p646_p12 = scmp.lt.u32.totalorder %s941_s29, %s992_s2 }
 0x158   : > { %p647_p4 = scmp.lt.u32.totalorder %s645_s24, %s641_s8  ;;  %p649_p5 = scmp.lt.u32.totalorder %s641_s8, %s941_s29 }
 0x159   : > { %p643_p2 = pnand %p642_p13, %p1013_p10 }
 0x15a   : > { %p648_p8 = por %p647_p4, %p646_p12 }
 0x15b   : > { %p644_p6 = pneg %p643_p2 }
 0x15c   : > { %p650_p11 = por %p649_p5, %p648_p8 }
 0x15e   : > { %p651_p1 = pnand %p650_p11, %p644_p6 }
 0x160   : > { %654 = shalt.err (!%p651_p1)
}
 0x161   : > { %499 = dma.vmem_to_hbm [thread:$0]  (%p1013_p10), %s943_s26, 128, %s941_s29, %s302_s17  }
 0x162 PF: > { %s329_s5 = sand.u32 1, %s693_s9   ;;  %p1014_p0 = scmp.ne.s32.totalorder %s1003_s22, 0 }
 0x163   : > { %p1015_p9 = scmp.ge.s32.totalorder %s713_s14, 2  ;;  %s330_s18 = scalar_lea.sflag [#allocation4], %s329_s5 }
 0x165   : > { %p510_p3 = pnand %p1015_p9, %p1014_p0 }
 0x167   : > { %688 = dma.done.wait (!%p510_p3), %s330_s18, 128  }
 0x168   : > { %690 = vsyncadd (!%p510_p3), %s330_s18, 4294967168  ;;  %s19_s14 = sadd.s32 1, %s713_s14   ;;  %s1016_s9 = smov %s697_s10 }
 0x169   : > { %p16_p7 = scmp.ge.s32.totalorder %s19_s14, 4   ;;  %s1017_s10 = smov %s701_s11 }
 0x16a   : > { %s1018_s11 = smov %s855_s25  ;;  %s1019_s12 = smov %s709_s13 }
 0x16b   : > { %s1020_s13 = smov %s1022_s28  ;;  %18 = sbr.rel (!%p16_p7) target bundleno = 7 (0x7), region = 79 }
 0x172   :  { %335 = vsyncpa [#allocation3], 1 }
 0x173   :  { %337 = vsyncpa [#allocation3 + $0x1], 1 }
 0x174   :  { %338 = vsyncpa [#allocation6], 1 }
 0x175   :  { %340 = vsyncpa [#allocation6 + $0x1], 1 }
 0x176   :  { %341 = vsyncpa [#allocation4], 1 }
 0x177   :  { %343 = vsyncpa [#allocation4 + $0x1], 1 }

</bundles_post_ra>
